<compile_context>
chip_gen: v7x
topology: tpu7x:2x2x1
jax: 0.10.0
libtpu: 0.0.40
codegen_flags: <defaults>
</compile_context>

<pallas_src>
import functools

import jax
import jax.numpy as jnp
from jax.experimental import pallas as pl
from jax.experimental.pallas import tpu as pltpu

LN_EPS = 1e-5
LANE = 128
SUBLANE = 8
MAX_ROW_TILE = 1024          # rows per grid step upper bound (review: 512-1024)


def _round_up(x, m):
    return ((x + m - 1) // m) * m


@functools.lru_cache(maxsize=None)
def _vmem_budget_bytes():
    """Generation-aware VMEM budget (v5e/v6e: 128 MiB/TC, v7x: 64 MiB/TC)."""
    try:
        cap = int(pltpu.get_tpu_info().vmem_capacity_bytes)
    except Exception:
        cap = 64 * 1024 * 1024            # conservative fallback (v7x per-TC)
    # Leave ~37% headroom for compiler scratch / spills (~40 MiB budget on v7x).
    return min(int(cap * 0.625), 80 * 1024 * 1024)


def _choose_row_tile(n, vocab_pad, hidden_pad, out_itemsize, budget):
    """Largest sublane-aligned row tile that fits the VMEM budget and keeps >=2 grid steps."""
    # Row-tile-independent bytes: single-buffered table + LN params + headroom.
    fixed = vocab_pad * hidden_pad * 2 + 2 * hidden_pad * 4 + (4 << 20)
    # Per-row bytes: double-buffered output block + double-buffered idx block +
    # one-hot (bf16) + f32 emb intermediates.
    per_row = 2 * hidden_pad * out_itemsize + 2 * 4 + vocab_pad * 2 + hidden_pad * 4
    by_budget = max(SUBLANE, ((budget - fixed) // per_row) // SUBLANE * SUBLANE)
    # >=2 grid steps when possible so both v7x TensorCores get work; on 1-TC
    # chips an extra grid step costs ~0.35 us (negligible).
    by_split = max(SUBLANE, _round_up(-(-n // 2), SUBLANE))
    return int(min(MAX_ROW_TILE, by_budget, by_split))


def _embed_ln_kernel(idx_ref, table_ref, gamma_ref, beta_ref, o_ref, *, hidden):
    """One grid step: TILE token rows -> one-hot @ table (MXU) fused with LayerNorm."""
    idx = idx_ref[...]                                    # (TILE, 1) int32
    vocab_p = table_ref.shape[0]                          # 128-aligned vocab rows

    # Embedding gather as one-hot @ table on the MXU (bf16 in, f32 accumulate).
    # Only a (1, Vp) iota row is generated per step (the previous TILExVp
    # broadcasted_iota was ~1/3 of the per-step VPU work); the compare
    # broadcasts it against the (TILE, 1) ids.
    iota_row = jax.lax.broadcasted_iota(jnp.int32, (1, vocab_p), 1)
    onehot = (iota_row == idx).astype(table_ref.dtype)    # (TILE, Vp)
    emb = jnp.dot(onehot, table_ref[...],
                  preferred_element_type=jnp.float32)     # (TILE, Hp) f32

    # LayerNorm over the *real* hidden width H.  Padded hidden lanes of `emb`
    # are exactly zero (zero-padded table columns), so raw sums over Hp equal
    # sums over H.  Single-pass E[x^2]-E[x]^2 with f32 accumulation is accurate
    # for embedding-scale values and needs no lane masking for the pad columns.
    inv_h = 1.0 / float(hidden)
    s = jnp.sum(emb, axis=-1, keepdims=True)
    sq = jnp.sum(emb * emb, axis=-1, keepdims=True)
    mean = s * inv_h
    var = sq * inv_h - mean * mean
    xhat = (emb - mean) * jax.lax.rsqrt(var + LN_EPS)
    # gamma/beta padded lanes are zero -> padded output lanes stay exactly zero.
    o_ref[...] = (xhat * gamma_ref[...] + beta_ref[...]).astype(o_ref.dtype)
    # TODO(synk): training-mode dropout is stochastic and intentionally not baked
    # into the kernel (eval semantics: identity).


@functools.partial(jax.jit, static_argnames=("hidden", "out_dtype"))
def embed_layernorm(indices, table_p, gamma_p, beta_p, *, hidden,
                    out_dtype=jnp.float32):
    """indices: (...,) int ids; table_p: (V_pad, H_pad) bf16 (pre-padded, 128-aligned
    rows/cols); gamma_p/beta_p: (1, H_pad) f32.  Returns (..., hidden) out_dtype.
    Pass out_dtype=jnp.bfloat16 to halve output HBM writeback when downstream
    consumers accept bf16 activations (f32 kept as default for module fidelity)."""
    orig_shape = indices.shape
    flat = indices.reshape(-1).astype(jnp.int32)
    n = flat.shape[0]
    vocab_pad, hidden_pad = table_p.shape

    budget = _vmem_budget_bytes()
    out_itemsize = jnp.dtype(out_dtype).itemsize
    tile = _choose_row_tile(n, vocab_pad, hidden_pad, out_itemsize, budget)

    grid = _round_up(n, tile) // tile
    n_pad = grid * tile
    if n_pad != n:
        # Throwaway rows use id 0 (always a valid, non-aliasing row); they are
        # sliced off below, so their values never escape.
        flat = jnp.pad(flat, (0, n_pad - n))
    idx2 = flat.reshape(n_pad, 1)

    kernel = functools.partial(_embed_ln_kernel, hidden=hidden)
    out = pl.pallas_call(
        kernel,
        out_shape=jax.ShapeDtypeStruct((n_pad, hidden_pad), out_dtype),
        grid=(grid,),
        in_specs=[
            pl.BlockSpec((tile, 1), lambda i: (i, 0)),           # token ids (pipelined)
            # Grid-invariant operands: whole-array, single VMEM copy (no
            # double-buffer allocation, never re-fetched across grid steps).
            pl.BlockSpec(memory_space=pltpu.MemorySpace.VMEM),   # embedding table
            pl.BlockSpec(memory_space=pltpu.MemorySpace.VMEM),   # LN gamma
            pl.BlockSpec(memory_space=pltpu.MemorySpace.VMEM),   # LN beta
        ],
        out_specs=pl.BlockSpec((tile, hidden_pad), lambda i: (i, 0)),
        compiler_params=pltpu.CompilerParams(
            dimension_semantics=("parallel",),
            vmem_limit_bytes=budget,
        ),
    )(idx2, table_p, gamma_p, beta_p)
    # TODO(synk): for vocabularies whose bf16 table exceeds the VMEM budget, switch
    # to an HBM-resident table (memory_space=pl.ANY) with scalar-prefetched ids and
    # a manually double-buffered DMA row gather instead of the resident one-hot matmul.

    if n_pad != n or hidden_pad != hidden:
        out = out[:n, :hidden]
    return out.reshape(orig_shape + (hidden,))


@functools.partial(jax.jit, static_argnames=("hidden",))
def _visit_row(visit_table_p, gamma_p, beta_p, *, hidden):
    """LayerNorm(visit_table[0]) for the single visit token: tiny, plain jnp."""
    x = visit_table_p[0, :hidden].astype(jnp.float32)
    mean = jnp.mean(x)
    var = jnp.mean(jnp.square(x - mean))
    xhat = (x - mean) * jax.lax.rsqrt(var + LN_EPS)
    return xhat * gamma_p[0, :hidden] + beta_p[0, :hidden]


def feature_embedder_forward(params, features, number=1):
    """Mirrors FeatureEmbedder.forward(features, number) -> (embeddings, masks)."""
    dx_ids = features[f"dx_ints{number}"]
    proc_ids = features[f"proc_ints{number}"]
    batch_size = dx_ids.shape[0]
    hidden = params["hidden"]
    # A single nn.LayerNorm is shared across dx / proc / visit embeddings in the
    # PyTorch module (one self.layernorm applied to every entry) -> shared params.
    gamma, beta = params["ln_gamma"], params["ln_beta"]

    embeddings = {}
    embeddings[f"dx_ints{number}"] = embed_layernorm(
        dx_ids, params["dx_table"], gamma, beta, hidden=hidden)
    embeddings[f"proc_ints{number}"] = embed_layernorm(
        proc_ids, params["proc_table"], gamma, beta, hidden=hidden)

    # Visit embedding: identical for every batch row -> compute one 1xH row with
    # plain jnp (no per-row kernel launch / pad-slice wrapper) and broadcast.
    visit = _visit_row(params["visit_table"], gamma, beta, hidden=hidden)
    embeddings[f"visit{number}"] = jnp.broadcast_to(
        visit.reshape(1, 1, hidden), (batch_size, 1, hidden))

    masks = {f"visit{number}": jnp.ones((batch_size, 1), dtype=jnp.float32)}
    return embeddings, masks


def init_params(key, vocab_dx, vocab_proc, hidden):
    """nn.Embedding / nn.LayerNorm parameters, stored pre-padded in compute dtype."""
    hidden_pad = _round_up(hidden, LANE)

    def make_table(k, vocab_rows, padding_row=None):
        t = jax.random.normal(k, (vocab_rows, hidden), jnp.float32)
        if padding_row is not None:           # nn.Embedding padding_idx semantics
            t = t.at[padding_row].set(0.0)
        # Vocab rows are the lane (MXU-K) dim of the one-hot matmul: 128-align
        # them so the compare and MXU K tiling are unmasked and clean.
        rows_pad = _round_up(vocab_rows, LANE)
        t = jnp.pad(t, ((0, rows_pad - vocab_rows), (0, hidden_pad - hidden)))
        return t.astype(jnp.bfloat16)

    k_dx, k_proc, k_visit = jax.random.split(key, 3)
    pad_h = hidden_pad - hidden
    gamma = jnp.ones((1, hidden), jnp.float32)
    beta = jnp.zeros((1, hidden), jnp.float32)
    return {
        "dx_table": make_table(k_dx, vocab_dx + 1, padding_row=vocab_dx),
        "proc_table": make_table(k_proc, vocab_proc + 1, padding_row=vocab_proc),
        "visit_table": make_table(k_visit, 1),
        "ln_gamma": jnp.pad(gamma, ((0, 0), (0, pad_h))),
        "ln_beta": jnp.pad(beta, ((0, 0), (0, pad_h))),
        "hidden": hidden,
    }


def _reference_embed_layernorm(indices, table_p, gamma_p, beta_p, hidden):
    """Pure-JAX reference (gather + LayerNorm) for correctness checking."""
    emb = table_p[indices.astype(jnp.int32), :hidden].astype(jnp.float32)
    mean = jnp.mean(emb, axis=-1, keepdims=True)
    var = jnp.mean(jnp.square(emb - mean), axis=-1, keepdims=True)
    xhat = (emb - mean) / jnp.sqrt(var + LN_EPS)
    return xhat * gamma_p[0, :hidden] + beta_p[0, :hidden]


if __name__ == "__main__":
    # Small shapes consistent with the module.
    batch = 2
    seq_dx = 8
    seq_proc = 6
    hidden = 32
    vocab_dx = 30
    vocab_proc = 20

    key = jax.random.PRNGKey(0)
    k_params, k_dx, k_proc = jax.random.split(key, 3)

    params = init_params(k_params, vocab_dx, vocab_proc, hidden)

    features = {
        # include padding ids (== vocab size) to exercise the zeroed padding_idx row
        "dx_ints1": jax.random.randint(
            k_dx, (batch, seq_dx), 0, vocab_dx + 1, dtype=jnp.int32),
        "proc_ints1": jax.random.randint(
            k_proc, (batch, seq_proc), 0, vocab_proc + 1, dtype=jnp.int32),
    }

    embeddings, masks = feature_embedder_forward(params, features, number=1)
    jax.block_until_ready(embeddings)
    jax.block_until_ready(masks)

    # Shape checks.
    assert embeddings["dx_ints1"].shape == (batch, seq_dx, hidden)
    assert embeddings["proc_ints1"].shape == (batch, seq_proc, hidden)
    assert embeddings["visit1"].shape == (batch, 1, hidden)
    assert masks["visit1"].shape == (batch, 1)

    # Numerical checks against a pure-JAX reference.
    ref_dx = _reference_embed_layernorm(
        features["dx_ints1"], params["dx_table"],
        params["ln_gamma"], params["ln_beta"], hidden)
    ref_proc = _reference_embed_layernorm(
        features["proc_ints1"], params["proc_table"],
        params["ln_gamma"], params["ln_beta"], hidden)
    ref_visit = _reference_embed_layernorm(
        jnp.zeros((batch, 1), jnp.int32), params["visit_table"],
        params["ln_gamma"], params["ln_beta"], hidden)
    assert jnp.allclose(embeddings["dx_ints1"], ref_dx, atol=1e-3, rtol=1e-3)
    assert jnp.allclose(embeddings["proc_ints1"], ref_proc, atol=1e-3, rtol=1e-3)
    assert jnp.allclose(embeddings["visit1"], ref_visit, atol=1e-3, rtol=1e-3)

    print("KERNEL_OK")
</pallas_src>

<mosaic_0001>
module attributes {stable_mosaic.version = 11 : i64} {
  func.func @_embed_ln_kernel(%arg0: i32, %arg1: memref<8x1xi32, #tpu.memory_space<vmem>>, %arg2: memref<128x128xbf16, #tpu.memory_space<vmem>>, %arg3: memref<1x128xf32, #tpu.memory_space<vmem>>, %arg4: memref<1x128xf32, #tpu.memory_space<vmem>>, %arg5: memref<8x128xf32, #tpu.memory_space<vmem>>) attributes {dimension_semantics = [#tpu.dimension_semantics<parallel>], iteration_bounds = array<i64: 2>, scalar_prefetch = 0 : i64, scratch_operands = 0 : i64, tpu.core_type = #tpu.core_type<tc>, window_params = [{transform_indices = @transform_0, window_bounds = array<i64: 8, 1>}, {pipeline_mode = #tpu.pipeline_mode<synchronous>, transform_indices = @transform_1, window_bounds = array<i64: 128, 128>}, {pipeline_mode = #tpu.pipeline_mode<synchronous>, transform_indices = @transform_2, window_bounds = array<i64: 1, 128>}, {pipeline_mode = #tpu.pipeline_mode<synchronous>, transform_indices = @transform_3, window_bounds = array<i64: 1, 128>}, {transform_indices = @transform_4, window_bounds = array<i64: 8, 128>}]} {
    %c0 = arith.constant 0 : index
    %c0_0 = arith.constant 0 : index
    %0 = vector.load %arg1[%c0, %c0_0] : memref<8x1xi32, #tpu.memory_space<vmem>>, vector<8x1xi32>
    %1 = tpu.iota {dimensions = array<i32: 1>} : vector<1x128xi32>
    %2 = vector.broadcast %1 : vector<1x128xi32> to vector<8x128xi32>
    %3 = vector.broadcast %0 : vector<8x1xi32> to vector<8x128xi32>
    %4 = arith.cmpi eq, %2, %3 : vector<8x128xi32>
    %5 = arith.extui %4 : vector<8x128xi1> to vector<8x128xi32>
    %6 = arith.sitofp %5 : vector<8x128xi32> to vector<8x128xf32>
    %7 = arith.truncf %6 : vector<8x128xf32> to vector<8x128xbf16>
    %c0_1 = arith.constant 0 : index
    %c0_2 = arith.constant 0 : index
    %8 = vector.load %arg2[%c0_1, %c0_2] : memref<128x128xbf16, #tpu.memory_space<vmem>>, vector<128x128xbf16>
    %cst = arith.constant dense<0.000000e+00> : vector<8x128xf32>
    %9 = tpu.matmul %7, %8, %cst {dimension_numbers = #tpu.dot_dimension_numbers<[1], [0], [0], [1], [0, 0, 1, 1], [], []>} : vector<8x128xbf16>, vector<128x128xbf16>, vector<8x128xf32> -> vector<8x128xf32>
    %cst_3 = arith.constant dense<0.000000e+00> : vector<8xf32>
    %10 = vector.multi_reduction <add>, %9, %cst_3 [1] : vector<8x128xf32> to vector<8xf32>
    %11 = vector.shape_cast %10 : vector<8xf32> to vector<8x1xf32>
    %12 = arith.mulf %9, %9 : vector<8x128xf32>
    %cst_4 = arith.constant dense<0.000000e+00> : vector<8xf32>
    %13 = vector.multi_reduction <add>, %12, %cst_4 [1] : vector<8x128xf32> to vector<8xf32>
    %14 = vector.shape_cast %13 : vector<8xf32> to vector<8x1xf32>
    %cst_5 = arith.constant 3.125000e-02 : f32
    %15 = vector.broadcast %cst_5 : f32 to vector<8x1xf32>
    %16 = arith.mulf %11, %15 : vector<8x1xf32>
    %cst_6 = arith.constant 3.125000e-02 : f32
    %17 = vector.broadcast %cst_6 : f32 to vector<8x1xf32>
    %18 = arith.mulf %14, %17 : vector<8x1xf32>
    %19 = arith.mulf %16, %16 : vector<8x1xf32>
    %20 = arith.subf %18, %19 : vector<8x1xf32>
    %21 = vector.broadcast %16 : vector<8x1xf32> to vector<8x128xf32>
    %22 = arith.subf %9, %21 : vector<8x128xf32>
    %cst_7 = arith.constant 9.99999974E-6 : f32
    %23 = vector.broadcast %cst_7 : f32 to vector<8x1xf32>
    %24 = arith.addf %20, %23 : vector<8x1xf32>
    %25 = math.rsqrt %24 : vector<8x1xf32>
    %26 = vector.broadcast %25 : vector<8x1xf32> to vector<8x128xf32>
    %27 = arith.mulf %22, %26 : vector<8x128xf32>
    %c0_8 = arith.constant 0 : index
    %c0_9 = arith.constant 0 : index
    %28 = vector.load %arg3[%c0_8, %c0_9] : memref<1x128xf32, #tpu.memory_space<vmem>>, vector<1x128xf32>
    %29 = vector.broadcast %28 : vector<1x128xf32> to vector<8x128xf32>
    %30 = arith.mulf %27, %29 : vector<8x128xf32>
    %c0_10 = arith.constant 0 : index
    %c0_11 = arith.constant 0 : index
    %31 = vector.load %arg4[%c0_10, %c0_11] : memref<1x128xf32, #tpu.memory_space<vmem>>, vector<1x128xf32>
    %32 = vector.broadcast %31 : vector<1x128xf32> to vector<8x128xf32>
    %33 = arith.addf %30, %32 : vector<8x128xf32>
    %c0_12 = arith.constant 0 : index
    %c0_13 = arith.constant 0 : index
    %34 = vector.load %arg5[%c0_12, %c0_13] : memref<8x128xf32, #tpu.memory_space<vmem>>, vector<8x128xf32>
    tpu.vector_store %arg5[%c0_12, %c0_13], %33 {strides = array<i32>} : memref<8x128xf32, #tpu.memory_space<vmem>>, vector<8x128xf32>,
    return
  }
  func.func @transform_0(%arg0: i32) -> (i32, i32) {
    %c0_i32 = arith.constant 0 : i32
    %c0_i32_0 = arith.constant 0 : i32
    return %arg0, %c0_i32 : i32, i32
  }
  func.func @transform_1(%arg0: i32) -> (i32, i32) {
    %c0_i32 = arith.constant 0 : i32
    %c0_i32_0 = arith.constant 0 : i32
    %c0_i32_1 = arith.constant 0 : i32
    return %c0_i32, %c0_i32_0 : i32, i32
  }
  func.func @transform_2(%arg0: i32) -> (i32, i32) {
    %c0_i32 = arith.constant 0 : i32
    %c0_i32_0 = arith.constant 0 : i32
    %c0_i32_1 = arith.constant 0 : i32
    return %c0_i32, %c0_i32_0 : i32, i32
  }
  func.func @transform_3(%arg0: i32) -> (i32, i32) {
    %c0_i32 = arith.constant 0 : i32
    %c0_i32_0 = arith.constant 0 : i32
    %c0_i32_1 = arith.constant 0 : i32
    return %c0_i32, %c0_i32_0 : i32, i32
  }
  func.func @transform_4(%arg0: i32) -> (i32, i32) {
    %c0_i32 = arith.constant 0 : i32
    %c0_i32_0 = arith.constant 0 : i32
    return %arg0, %c0_i32 : i32, i32
  }
}

</mosaic_0001>

<bundles_post_ra>
// kernel: embed_layernorm.1
= control target key start
LH: loop header
LB: loop body
LE: loop exit
PB: predicated region body
PF: predicated region fallthrough
CT: control target
= control target key end

     0   :  { %9 = vsyncpa [#allocation3], 0  ;;  %s579_s15 = smov 0   ;;  %s648_s0 = inlined_call_operand.vmem [shape: s32[16,1], index: 0, kind: input, shape index: {}]   ;;  %s649_s1 = inlined_call_operand.hbm [shape: bf16[128,128], index: 1, kind: input, shape index: {}]   ;;  %s650_s2 = inlined_call_operand.vmem [shape: f32[1,128], index: 2, kind: input, shape index: {}]   ;;  %s651_s3 = inlined_call_operand.vmem [shape: f32[1,128], index: 3, kind: input, shape index: {}]   ;;  %s652_s4 = inlined_call_operand.vmem [shape: f32[16,128], index: 4, kind: output, shape index: {}]  }
   0x1 LB: > { %s585_s16 = sadd.s32 4294967295, %s545_s15   ;;  %p420_p0 = scmp.ge.s32.totalorder %s545_s15, 1  ;;  %s545_s15 = sphi %s579_s15, %s15_s15  }
   0x2   : > { %p135_p1 = scmp.lt.s32.totalorder %s545_s15, 3  ;;  %s547_s17 = smov [#allocation2]  }
   0x3   : > { %s147_s18 = sshll.u32 %s547_s17, 4  ;;  %p653_p3 = scmp.eq.s32.totalorder %s585_s16, 0  ;;  %s148_s18 = int_to_ptr.vmem [resolvable:$true] %s147_s18 }
   0x4   : > { %p589_p2 = pnand %p420_p0, %p135_p1  ;;  %s507_s23 = scalar_lea.hbm %s649_s1, 1024 }
   0x5   : > { %p508_p6 = scmp.ne.s32.totalorder %s649_s1, %s507_s23  ;;  %p514_p10 = scmp.lt.u32.totalorder %s507_s23, %s649_s1 }
   0x6   : > { %s655_s19 = scalar_select %p589_p2, 1, 0 }
   0x7   : > { %p475_p4 = pneg %p589_p2 }
   0x9   : > { %p598_p5 = pnand %p653_p3, %p475_p4 }
   0xb   : > { %p509_p7 = pneg %p598_p5 }
   0xd   : > { %p510_p8 = pnand %p509_p7, %p508_p6 }
   0xf   : > { %p511_p9 = pneg %p510_p8 }
  0x11   : > { %p516_p11 = pnand %p514_p10, %p511_p9 }
  0x13   : > { %519 = shalt.err (!%p516_p11)
}
  0x14   : > { %s520_s28 = scalar_lea.vmem %s148_s18, 1024  ;;  %p528_p1 = scmp.lt.s32.totalorder %s148_s18, %s148_s18 }
  0x15   : > { %p521_p12 = scmp.ne.s32.totalorder %s148_s18, %s520_s28  ;;  %p529_p4 = scmp.lt.s32.totalorder %s520_s28, %s520_s28 }
  0x17   : > { %p523_p13 = pnand %p521_p12, %p509_p7  ;;  %p530_p3 = por %p529_p4, %p528_p1 }
  0x19   : > { %p524_p0 = pneg %p523_p13 }
  0x1b   : > { %p531_p2 = pnand %p530_p3, %p524_p0 }
  0x1d   : > { %534 = shalt.err (!%p531_p2)
}
  0x1e   : > { %s548_s29 = smov 64   ;;  %s549_s30 = smov 4  }
  0x1f   : > { %478 = dma.hbm_to_vmem [thread:$0]  (!%p598_p5), %s649_s1, 1024, %s148_s18, [#allocation3], %s548_s29, %s548_s29, %s549_s30  }
  0x20   : > { %p657_p6 = scmp.ne.s32.totalorder %s655_s19, 0 }
  0x21   : > { %p658_p8 = scmp.eq.s32.totalorder (!%p657_p6), %s585_s16, 0 }
  0x22   : > { %176 = sbr.rel (%p657_p6) target bundleno = 558 (0x22e), region = 36 }
  0x29   : > { %540 = dma.done.wait (%p658_p8), [#allocation3], 1024   ;;  %p659_p7 = pmov %p658_p8 }
  0x2a   : > { %p200_p2 = scmp.lt.s32.totalorder %s585_s16, 1  ;;  %v550_v0 = vmov 0   ;;  %v551_v1 = vmov 0.0   ;;  %v497_v3 = vld [vmem:[#allocation2] sm:$0xff]   ;;  %vm552_vm0 = vmmov 0   ;;  %v498_v4 = vld [vmem:[#allocation2 + $0x8] sm:$0xff]   ;;  %v210_v11 = vlaneseq }
  0x2b   : > { %542 = vsyncadd (%p659_p7), [#allocation3], 4294966272  ;;  %496 = vset.pattern.permute.xlu0 %v550_v0  ;;  %451 = vmatprep.subr.bf16.mxu0 %v551_v1  ;;  %v499_v5 = vld [vmem:[#allocation2 + $0x10] sm:$0xff]   ;;  %v500_v6 = vld [vmem:[#allocation2 + $0x18] sm:$0xff]   ;;  %v553_v14 = vmov 1.0|1.0  }
  0x2c   : > { %s661_s16 = smov (!%p200_p2, %s585_s16), 1  ;;  %467 = vmatprep.mubr.msk.bf16.mxu0 %vm552_vm0, %v551_v1  ;;  %452 = vmatpush3.bf16.msra.mxu0 %v497_v3  ;;  %v501_v7 = vld [vmem:[#allocation2 + $0x20] sm:$0xff]   ;;  %v502_v8 = vld [vmem:[#allocation2 + $0x28] sm:$0xff]   ;;  %v503_v9 = vld [vmem:[#allocation2 + $0x30] sm:$0xff]   ;;  %v211_v12 = vand.u32 127, %v210_v11 }
  0x2d   : > { %s425_s7 = sshll.u32 %s661_s16, 3  ;;  %453 = vmatprep.subr.bf16.mxu0 %v551_v1  ;;  %v504_v10 = vld [vmem:[#allocation2 + $0x38] sm:$0xff]   ;;  %v438_v29 = vld [vmem:[%s650_s2] ss:$0 sm:$0xff] }
  0x2e   : > { %s203_s10 = scalar_lea.vmem %s648_s0, %s425_s7  ;;  %v439_v31 = vld [vmem:[%s651_s3] ss:$0 sm:$0xff]  ;;  %s207_s19 = scalar_lea.vmem %s652_s4, %s425_s7 }
  0x2f   : > { %v209_v2 = vld [vmem:[%s203_s10] sm:$0xff] }
  0x30   : > { %213 = vperm.xlu0 %496, %v209_v2   ;;  %454 = vmatpush3.bf16.msra.mxu0 %v498_v4 }
  0x31   : > { %455 = vmatprep.subr.bf16.mxu0 %v551_v1 }
  0x34   : > { %456 = vmatpush3.bf16.msra.mxu0 %v499_v5 }
  0x35   : > { %457 = vmatprep.subr.bf16.mxu0 %v551_v1 }
  0x38   : > { %458 = vmatpush3.bf16.msra.mxu0 %v500_v6 }
  0x39   : > { %459 = vmatprep.subr.bf16.mxu0 %v551_v1 }
  0x3c   : > { %460 = vmatpush3.bf16.msra.mxu0 %v501_v7 }
  0x3d   : > { %461 = vmatprep.subr.bf16.mxu0 %v551_v1 }
  0x40   : > { %462 = vmatpush3.bf16.msra.mxu0 %v502_v8 }
  0x41   : > { %463 = vmatprep.subr.bf16.mxu0 %v551_v1 }
  0x44   : > { %464 = vmatpush3.bf16.msra.mxu0 %v503_v9 }
  0x45   : > { %465 = vmatprep.subr.bf16.mxu0 %v551_v1 }
  0x48   : > { %466 = vmatpush3.bf16.msra.mxu0 %v504_v10 }
  0xaf   : > { %v214_v13 = vpop.permute.xlu0 %213 }
  0xb0   : > { %vm215_vm1 = vcmp.eq.s32.totalorder %v211_v12, %v214_v13 }
  0xb1   : > { %vm436_vm2 = vmpackc.low %vm215_vm1, %vm215_vm1 }
  0xb2   : > { %468 = vmatmul.mubr.msk.bf16.vlgmr.msra.gmra.mrb[0].mxu0 %vm436_vm2, %v553_v14 }
 0x185   : > { %v317_v15 = vpop.f32.mrb[0].mxu0 }
 0x186   : > { %323 = vadd.xlane.f32.xlu0 %v317_v15  ;;  %v469_v16 = vpop.f32.mrb[1].mxu0  ;;  %v325_v17 = vmul.f32 %v317_v15, %v317_v15 }
 0x187   : > { %v320_v18 = vpop.f32.mrb[2].mxu0 }
 0x188   : > { %326 = vadd.xlane.f32.xlu1 %v325_v17  ;;  %v470_v19 = vpop.f32.mrb[3].mxu0 }
 0x213   : > { %v324_v20 = vpop.xlane.xlu0 %323 }
 0x214   : > { %v328_v21 = vmul.f32 0.03125, %v324_v20 }
 0x215   : > { %v327_v22 = vpop.xlane.xlu1 %326 }
 0x216   : > { %v330_v23 = vmul.f32 %v328_v21, %v328_v21  ;;  %v329_v24 = vmul.f32 0.03125, %v327_v22  ;;  %v332_v27 = vsub.f32 %v317_v15, %v328_v21 }
 0x218   : > { %v331_v25 = vsub.f32 %v329_v24, %v330_v23 }
 0x21a   : > { %v333_v26 = vadd.f32 1e-05, %v331_v25 }
 0x21c   : > { %505 = vrsqrt.f32 %v333_v26 }
 0x226   : > { %v506_v28 = vpop.eup %505 }
 0x227   : > { %v335_v30 = vmul.f32 %v506_v28, %v332_v27 }
 0x229   : > { %v343_v32 = vmul.f32 %v438_v29, %v335_v30 }
 0x22b   : > { %v351_v33 = vadd.f32 %v439_v31, %v343_v32 }
 0x22d   : > { %352 = vst [vmem:[%s207_s19] sm:$0xff] %v351_v33 }
 0x22e PF: > { %s15_s15 = sadd.s32 1, %s545_s15  }
 0x22f   : > { %p12_p3 = scmp.ge.s32.totalorder %s15_s15, 4  }
 0x231   :  { %14 = sbr.rel (!%p12_p3) target bundleno = 1 (0x1), region = 71 }
 0x238   :  { %372 = vsyncpa [#allocation3], 1 }
 0x239   :  { %374 = vsyncpa [#allocation3 + $0x1], 1 }

</bundles_post_ra>
